<compile_context>
chip_gen: v6e
topology: v6e:2x2x1
jax: 0.10.0
libtpu: 0.0.40
codegen_flags: <defaults>
</compile_context>

<pallas_src>
import functools

import jax
import jax.numpy as jnp
from jax.experimental import pallas as pl
from jax.experimental.pallas import tpu as pltpu


def _make_routing_kernel(hw_total: int, thw: int):
    """Build the kernel; hw_total/thw are static so the tail-mask path is only
    emitted (and only *executed on the last spatial step*) when H*W does not
    divide evenly by the spatial tile."""
    needs_mask = (hw_total % thw) != 0

    def kernel(x_ref, w_ref, b_ref, o_ref, acc_ref):
        # x_ref  : (tn, C, thw)  native activation dtype (f32 or bf16)
        # w_ref  : (C, E) f32    torch Linear weight, transposed, pre-scaled by 1/(H*W)
        # b_ref  : (1, E) f32
        # o_ref  : (tn, E) f32
        # acc_ref: (tn, C) f32   running spatial sums (persists across k steps)
        k = pl.program_id(1)
        last_k = pl.num_programs(1) - 1

        @pl.when(k == 0)
        def _init():
            acc_ref[...] = jnp.zeros_like(acc_ref)

        if needs_mask:
            # Hot path: every non-final spatial tile is fully in bounds; keep
            # the iota/compare/select off of it (free VALU slack, esp. for the
            # bf16->f32 cast on v5e which has no bf16 VPU).
            @pl.when(k != last_k)
            def _acc_full():
                acc_ref[...] += jnp.sum(x_ref[...].astype(jnp.float32), axis=-1)

            @pl.when(k == last_k)
            def _acc_tail():
                x = x_ref[...].astype(jnp.float32)
                pos = k * thw + jax.lax.broadcasted_iota(
                    jnp.int32, x.shape, x.ndim - 1)
                x = jnp.where(pos < hw_total, x, 0.0)
                acc_ref[...] += jnp.sum(x, axis=-1)
        else:
            # Sum-then-scale: raw f32 sums; the 1/(H*W) scale lives in w_ref.
            acc_ref[...] += jnp.sum(x_ref[...].astype(jnp.float32), axis=-1)

        @pl.when(k == last_k)
        def _finalize():
            logits = jnp.dot(acc_ref[...], w_ref[...],
                             preferred_element_type=jnp.float32) + b_ref[...]
            o_ref[...] = jax.nn.sigmoid(logits).astype(o_ref.dtype)

    return kernel


@functools.lru_cache(maxsize=1)
def _per_generation_knobs():
    """DMA-block / VMEM budgets derived from the TPU generation.

    v7x-class cores: 64 MiB VMEM/TC and 2 TensorCores per chip -> keep the
    double-buffered pipeline under ~48 MiB and split the batch across cores.
    v5e/v6e: 128 MiB VMEM, single TC -> the only lever is fewer, larger grid
    steps, so go big and do not bother splitting the batch.
    """
    vmem_cap = None
    try:
        vmem_cap = int(pltpu.get_tpu_info().vmem_capacity_bytes)
    except Exception:
        pass  # unknown generation / interpret mode: fall back conservatively
    if vmem_cap is not None and vmem_cap > 96 * 1024 * 1024:
        # v5e / v6e class (128 MiB VMEM, 1 TensorCore).
        return dict(x_block_bytes=16 * 1024 * 1024,
                    vmem_limit_bytes=64 * 1024 * 1024,
                    vmem_hard_cap=96 * 1024 * 1024,
                    split_batch=False)
    # v7x class (64 MiB/TC, 2 TensorCores) or unknown: conservative budget.
    return dict(x_block_bytes=12 * 1024 * 1024,
                vmem_limit_bytes=48 * 1024 * 1024,
                vmem_hard_cap=48 * 1024 * 1024,
                split_batch=(vmem_cap is not None))


def routing_forward(x_nchw, weight_ec, bias_e, *, tn=None, thw=None,
                    x_block_bytes=None):
    """x_nchw: (N, C, H, W) activation, kept in its native dtype on the HBM
    wire (bf16 stays bf16).  weight_ec: (E, C) torch nn.Linear weight.
    bias_e: (E,).  Returns sigmoid(mean_{H,W}(x) @ W.T + b), shape (N, E)."""
    n, c, h, w = x_nchw.shape
    hw = h * w
    e = weight_ec.shape[0]

    knobs = _per_generation_knobs()
    if x_block_bytes is None:
        x_block_bytes = knobs["x_block_bytes"]

    # Free reshape of contiguous NCHW; no dtype upcast of the big activation.
    x3 = x_nchw.reshape(n, c, hw)
    # Fold 1/(H*W) into the tiny weight so the hot loop is pure raw-sum
    # accumulation and the finalize is exactly sum @ (W.T/HW) + b.
    w_t = weight_ec.T.astype(jnp.float32) * (1.0 / hw)          # (C, E)
    b2 = bias_e.reshape(1, e).astype(jnp.float32)               # (1, E)

    dsize = jnp.dtype(x3.dtype).itemsize
    # Minimum spatial tile when splitting H*W: keep every strided DMA row
    # >= ~1 KiB (256 f32 lanes / 512 bf16 lanes) so the DMA engine stays at
    # full bandwidth on all generations.
    min_thw = min(hw, 256 if dsize >= 4 else 512)

    # --- spatial (lane) tile ------------------------------------------------
    if thw is None:
        thw = hw if hw <= 4096 else 4096
    if thw >= hw:
        thw = hw
    else:
        if thw % 128 != 0:
            raise ValueError("thw must be a multiple of 128 or equal to H*W")
        if thw < min_thw:
            raise ValueError(
                f"thw={thw} too small; need >= {min_thw} lanes per DMA row "
                f"for this dtype (or pass thw=H*W)")

    # --- batch tile -----------------------------------------------------------
    if tn is None:
        cap = x_block_bytes // max(1, c * thw * dsize)
        # If even an 8-row batch tile would blow the block budget at this
        # spatial tile (wide layers: large C x thw), halve the spatial tile
        # (128-aligned, >= min_thw) instead of forcing an oversized block that
        # risks a compile-time VMEM failure on v7x's 64 MiB core.
        while cap < 8 and thw != hw and thw > min_thw:
            thw = max(min_thw, ((thw // 2) // 128) * 128)
            cap = x_block_bytes // max(1, c * thw * dsize)
        cap = max(1, cap)
        if knobs["split_batch"] and n >= 16:
            # v7x megacore: guarantee grid[0] >= 2 so both TensorCores stream;
            # otherwise one core idles and ~half the chip's HBM BW is unused.
            cap = min(cap, max(8, (((n + 1) // 2) // 8) * 8))
        if n <= cap:
            tn = n
        else:
            tn = min(n, max(8, (cap // 8) * 8))
    if tn != n and tn % 8 != 0:
        raise ValueError("tn must equal N or be a multiple of 8")

    grid = (pl.cdiv(n, tn), pl.cdiv(hw, thw))
    kernel = _make_routing_kernel(hw, thw)

    # VMEM budget: double-buffered x block + resident weight/bias/acc/out,
    # clamped to the per-generation hard cap (48 MiB on v7x-class cores).
    x_block_b = tn * c * thw * dsize
    resident_b = (tn * c + 2 * (c * e + e + tn * e)) * 4
    needed = 2 * x_block_b + resident_b + (1 << 20)
    vmem_limit = int(min(max(knobs["vmem_limit_bytes"], needed),
                         knobs["vmem_hard_cap"]))

    # NOTE(correctness): when N % tn != 0 the padded batch rows of the final
    # tile accumulate whatever the padded block DMA brings in and pass through
    # sigmoid; this is safe ONLY because Pallas drops the out-of-bounds rows
    # of the (tn, E) output writeback.  Do not alias or accumulate into this
    # output without masking those rows.
    return pl.pallas_call(
        kernel,
        out_shape=jax.ShapeDtypeStruct((n, e), jnp.float32),
        grid=grid,
        in_specs=[
            # x: streamed; default double buffering + a large block beats a
            # third buffer (spend the VMEM on block size, not depth).
            pl.BlockSpec((tn, c, thw), lambda i, k: (i, 0, k)),
            pl.BlockSpec((c, e), lambda i, k: (0, 0)),   # weight: VMEM-resident
            pl.BlockSpec((1, e), lambda i, k: (0, 0)),   # bias:   VMEM-resident
        ],
        out_specs=pl.BlockSpec((tn, e), lambda i, k: (i, 0)),
        scratch_shapes=[pltpu.VMEM((tn, c), jnp.float32)],
        compiler_params=pltpu.CompilerParams(
            # Batch tiles shard across TensorCores on v7x; the spatial axis is
            # the sequential reduction carrying the accumulator.
            dimension_semantics=("parallel", "arbitrary"),
            vmem_limit_bytes=vmem_limit,
        ),
    )(x3, w_t, b2)


def _reference(x_nchw, weight_ec, bias_e):
    pooled = x_nchw.astype(jnp.float32).mean(axis=(2, 3))        # (N, C)
    logits = pooled @ weight_ec.T.astype(jnp.float32) + bias_e.astype(jnp.float32)
    return jax.nn.sigmoid(logits)


# TODO(synk): the surrounding Dynamic_conv2d / ResNet-56 conv+BN stack is left
# to XLA; this kernel covers the _routing (GAP -> Linear -> sigmoid) forward.

if __name__ == "__main__":
    key = jax.random.PRNGKey(0)
    k_x1, k_x2, k_w, k_b = jax.random.split(key, 4)

    C, E = 4, 8   # c_in, num_experts (K in Dynamic_conv2d)
    bound = 1.0 / float(C) ** 0.5
    weight = jax.random.uniform(k_w, (E, C), jnp.float32, -bound, bound)  # (E, C)
    bias = jax.random.uniform(k_b, (E,), jnp.float32, -bound, bound)      # (E,)

    # 1) Multi-step spatial reduction with a masked tail: H*W = 324, thw = 256
    #    -> 2 pipelined spatial tiles, exercising init / accumulate /
    #    tail-mask / finalize (mask only runs on the last step).
    x1 = jax.random.normal(k_x1, (2, C, 18, 18), dtype=jnp.float32)
    out1 = routing_forward(x1, weight, bias, thw=256)
    jax.block_until_ready(out1)
    ref1 = _reference(x1, weight, bias)
    assert out1.shape == (2, E)
    assert jnp.allclose(out1, ref1, atol=1e-5, rtol=1e-5), "tiled mismatch vs reference"

    # 2) Auto-tiled path at the small canonical shape (single spatial tile).
    x2 = jax.random.normal(k_x2, (2, C, 16, 16), dtype=jnp.float32)
    out2 = routing_forward(x2, weight, bias)
    jax.block_until_ready(out2)
    ref2 = _reference(x2, weight, bias)
    assert out2.shape == (2, E)
    assert jnp.allclose(out2, ref2, atol=1e-5, rtol=1e-5), "auto-tiled mismatch vs reference"

    print("KERNEL_OK")
</pallas_src>

<mosaic_0001>
module attributes {stable_mosaic.version = 11 : i64} {
  func.func @kernel(%arg0: i32, %arg1: i32, %arg2: memref<2x4x256xf32, #tpu.memory_space<vmem>>, %arg3: memref<4x8xf32, #tpu.memory_space<vmem>>, %arg4: memref<1x8xf32, #tpu.memory_space<vmem>>, %arg5: memref<2x8xf32, #tpu.memory_space<vmem>>, %arg6: memref<2x4xf32, #tpu.memory_space<vmem>>) attributes {dimension_semantics = [#tpu.dimension_semantics<parallel>, #tpu.dimension_semantics<arbitrary>], iteration_bounds = array<i64: 1, 2>, scalar_prefetch = 0 : i64, scratch_operands = 1 : i64, tpu.core_type = #tpu.core_type<tc>, window_params = [{transform_indices = @transform_0, window_bounds = array<i64: 2, 4, 256>}, {pipeline_mode = #tpu.pipeline_mode<synchronous>, transform_indices = @transform_1, window_bounds = array<i64: 4, 8>}, {pipeline_mode = #tpu.pipeline_mode<synchronous>, transform_indices = @transform_2, window_bounds = array<i64: 1, 8>}, {transform_indices = @transform_3, window_bounds = array<i64: 2, 8>}]} {
    %c0_i32 = arith.constant 0 : i32
    %0 = arith.cmpi eq, %arg1, %c0_i32 : i32
    %1 = arith.extui %0 : i1 to i32
    %c0_i32_0 = arith.constant 0 : i32
    %2 = arith.cmpi ne, %1, %c0_i32_0 : i32
    scf.if %2 {
      %cst = arith.constant 0.000000e+00 : f32
      %12 = vector.broadcast %cst : f32 to vector<2x4xf32>
      %c0 = arith.constant 0 : index
      %c0_6 = arith.constant 0 : index
      %13 = vector.load %arg6[%c0, %c0_6] : memref<2x4xf32, #tpu.memory_space<vmem>>, vector<2x4xf32>
      tpu.vector_store %arg6[%c0, %c0_6], %12 {strides = array<i32>} : memref<2x4xf32, #tpu.memory_space<vmem>>, vector<2x4xf32>,
    } else {
    }
    %c1_i32 = arith.constant 1 : i32
    %3 = arith.cmpi ne, %arg1, %c1_i32 : i32
    %4 = arith.extui %3 : i1 to i32
    %c0_i32_1 = arith.constant 0 : i32
    %5 = arith.cmpi ne, %4, %c0_i32_1 : i32
    scf.if %5 {
      %c0 = arith.constant 0 : index
      %c0_6 = arith.constant 0 : index
      %12 = vector.load %arg6[%c0, %c0_6] : memref<2x4xf32, #tpu.memory_space<vmem>>, vector<2x4xf32>
      %c0_7 = arith.constant 0 : index
      %c0_8 = arith.constant 0 : index
      %c0_9 = arith.constant 0 : index
      %13 = vector.load %arg2[%c0_7, %c0_8, %c0_9] : memref<2x4x256xf32, #tpu.memory_space<vmem>>, vector<2x4x256xf32>
      %cst = arith.constant dense<0.000000e+00> : vector<2x4xf32>
      %14 = vector.multi_reduction <add>, %13, %cst [2] : vector<2x4x256xf32> to vector<2x4xf32>
      %15 = arith.addf %12, %14 : vector<2x4xf32>
      %c0_10 = arith.constant 0 : index
      %c0_11 = arith.constant 0 : index
      %16 = vector.load %arg6[%c0_10, %c0_11] : memref<2x4xf32, #tpu.memory_space<vmem>>, vector<2x4xf32>
      tpu.vector_store %arg6[%c0_10, %c0_11], %15 {strides = array<i32>} : memref<2x4xf32, #tpu.memory_space<vmem>>, vector<2x4xf32>,
    } else {
    }
    %c1_i32_2 = arith.constant 1 : i32
    %6 = arith.cmpi eq, %arg1, %c1_i32_2 : i32
    %7 = arith.extui %6 : i1 to i32
    %c0_i32_3 = arith.constant 0 : i32
    %8 = arith.cmpi ne, %7, %c0_i32_3 : i32
    scf.if %8 {
      %c0 = arith.constant 0 : index
      %c0_6 = arith.constant 0 : index
      %c0_7 = arith.constant 0 : index
      %12 = vector.load %arg2[%c0, %c0_6, %c0_7] : memref<2x4x256xf32, #tpu.memory_space<vmem>>, vector<2x4x256xf32>
      %c256_i32 = arith.constant 256 : i32
      %13 = arith.muli %arg1, %c256_i32 : i32
      %14 = tpu.iota {dimensions = array<i32: 2>} : vector<2x4x256xi32>
      %15 = vector.broadcast %13 : i32 to vector<2x4x256xi32>
      %16 = arith.addi %15, %14 : vector<2x4x256xi32>
      %c324_i32 = arith.constant 324 : i32
      %17 = vector.broadcast %c324_i32 : i32 to vector<2x4x256xi32>
      %18 = arith.cmpi slt, %16, %17 : vector<2x4x256xi32>
      %cst = arith.constant 0.000000e+00 : f32
      %19 = vector.broadcast %cst : f32 to vector<2x4x256xf32>
      %20 = arith.select %18, %12, %19 : vector<2x4x256xi1>, vector<2x4x256xf32>
      %c0_8 = arith.constant 0 : index
      %c0_9 = arith.constant 0 : index
      %21 = vector.load %arg6[%c0_8, %c0_9] : memref<2x4xf32, #tpu.memory_space<vmem>>, vector<2x4xf32>
      %cst_10 = arith.constant dense<0.000000e+00> : vector<2x4xf32>
      %22 = vector.multi_reduction <add>, %20, %cst_10 [2] : vector<2x4x256xf32> to vector<2x4xf32>
      %23 = arith.addf %21, %22 : vector<2x4xf32>
      %c0_11 = arith.constant 0 : index
      %c0_12 = arith.constant 0 : index
      %24 = vector.load %arg6[%c0_11, %c0_12] : memref<2x4xf32, #tpu.memory_space<vmem>>, vector<2x4xf32>
      tpu.vector_store %arg6[%c0_11, %c0_12], %23 {strides = array<i32>} : memref<2x4xf32, #tpu.memory_space<vmem>>, vector<2x4xf32>,
    } else {
    }
    %c1_i32_4 = arith.constant 1 : i32
    %9 = arith.cmpi eq, %arg1, %c1_i32_4 : i32
    %10 = arith.extui %9 : i1 to i32
    %c0_i32_5 = arith.constant 0 : i32
    %11 = arith.cmpi ne, %10, %c0_i32_5 : i32
    scf.if %11 {
      %c0 = arith.constant 0 : index
      %c0_6 = arith.constant 0 : index
      %12 = vector.load %arg6[%c0, %c0_6] : memref<2x4xf32, #tpu.memory_space<vmem>>, vector<2x4xf32>
      %c0_7 = arith.constant 0 : index
      %c0_8 = arith.constant 0 : index
      %13 = vector.load %arg3[%c0_7, %c0_8] : memref<4x8xf32, #tpu.memory_space<vmem>>, vector<4x8xf32>
      %cst = arith.constant dense<0.000000e+00> : vector<2x8xf32>
      %14 = tpu.matmul %12, %13, %cst {dimension_numbers = #tpu.dot_dimension_numbers<[1], [0], [0], [1], [0, 0, 1, 1], [], []>} : vector<2x4xf32>, vector<4x8xf32>, vector<2x8xf32> -> vector<2x8xf32>
      %c0_9 = arith.constant 0 : index
      %c0_10 = arith.constant 0 : index
      %15 = vector.load %arg4[%c0_9, %c0_10] : memref<1x8xf32, #tpu.memory_space<vmem>>, vector<1x8xf32>
      %16 = vector.broadcast %15 : vector<1x8xf32> to vector<2x8xf32>
      %17 = arith.addf %14, %16 : vector<2x8xf32>
      %18 = arith.negf %17 : vector<2x8xf32>
      %19 = math.exp %18 : vector<2x8xf32>
      %cst_11 = arith.constant 1.000000e+00 : f32
      %20 = vector.broadcast %cst_11 : f32 to vector<2x8xf32>
      %21 = arith.addf %20, %19 : vector<2x8xf32>
      %22 = arith.divf %20, %21 : vector<2x8xf32>
      %c0_12 = arith.constant 0 : index
      %c0_13 = arith.constant 0 : index
      %23 = vector.load %arg5[%c0_12, %c0_13] : memref<2x8xf32, #tpu.memory_space<vmem>>, vector<2x8xf32>
      tpu.vector_store %arg5[%c0_12, %c0_13], %22 {strides = array<i32>} : memref<2x8xf32, #tpu.memory_space<vmem>>, vector<2x8xf32>,
    } else {
    }
    return
  }
  func.func @transform_0(%arg0: i32, %arg1: i32) -> (i32, i32, i32) {
    %c0_i32 = arith.constant 0 : i32
    %c0_i32_0 = arith.constant 0 : i32
    return %arg0, %c0_i32, %arg1 : i32, i32, i32
  }
  func.func @transform_1(%arg0: i32, %arg1: i32) -> (i32, i32) {
    %c0_i32 = arith.constant 0 : i32
    %c0_i32_0 = arith.constant 0 : i32
    %c0_i32_1 = arith.constant 0 : i32
    return %c0_i32, %c0_i32_0 : i32, i32
  }
  func.func @transform_2(%arg0: i32, %arg1: i32) -> (i32, i32) {
    %c0_i32 = arith.constant 0 : i32
    %c0_i32_0 = arith.constant 0 : i32
    %c0_i32_1 = arith.constant 0 : i32
    return %c0_i32, %c0_i32_0 : i32, i32
  }
  func.func @transform_3(%arg0: i32, %arg1: i32) -> (i32, i32) {
    %c0_i32 = arith.constant 0 : i32
    %c0_i32_0 = arith.constant 0 : i32
    return %arg0, %c0_i32 : i32, i32
  }
}

</mosaic_0001>

<bundles_post_ra>
// kernel: tpu_custom_call.1
= control target key start
LH: loop header
LB: loop body
LE: loop exit
PB: predicated region body
PF: predicated region fallthrough
CT: control target
= control target key end

     0   :  { %8 = vsyncpa [#allocation4], 0  ;;  %s946_s0 = inlined_call_operand.hbm [shape: f32[2,4,324], index: 0, kind: input, shape index: {}]   ;;  %s947_s1 = inlined_call_operand.hbm [shape: f32[4,8], index: 1, kind: input, shape index: {}]   ;;  %s948_s2 = inlined_call_operand.vmem [shape: f32[1,8], index: 2, kind: input, shape index: {}]   ;;  %s949_s3 = inlined_call_operand.hbm [shape: f32[2,8], index: 3, kind: output, shape index: {}]  }
   0x1   :  { %10 = vsyncpa [#allocation4 + $0x1], 0 }
   0x2   :  { %11 = vsyncpa [#allocation7], 0 }
   0x3   :  { %12 = vsyncpa [#allocation5], 0  ;;  %s784_s12 = smov 0   ;;  %s786_s13 = smov 0  }
   0x4   :  { %s788_s14 = smov 0   ;;  %s790_s15 = smov 0  }
   0x5   :  { %s792_s16 = smov 0   ;;  %s794_s17 = smov 0  }
   0x6 LB: > { %s503_s18 = sadd.s32 4294967295, %s754_s17   ;;  %s27_s19 = sadd.s32 1, %s750_s16  ;;  %s754_s17 = sphi %s794_s17, %s18_s17   ;;  %s750_s16 = sphi %s792_s16, %s961_s16   ;;  %s746_s15 = sphi %s790_s15, %s960_s15   ;;  %s742_s14 = sphi %s788_s14, %s959_s14   ;;  %s738_s13 = sphi %s786_s13, %s958_s13   ;;  %s734_s12 = sphi %s784_s12, %s957_s12  }
   0x7   : > { %p28_p0 = scmp.ge.s32.totalorder %s27_s19, 2  ;;  %s39_s20 = sadd.s32 1, %s742_s14 }
   0x8   : > { %p46_p1 = scmp.ne.s32.totalorder %s742_s14, %s738_s13  ;;  %p47_p2 = scmp.eq.s32.totalorder %s754_s17, 0 }
   0x9   : > { %s963_s19 = smov (%p28_p0, %s27_s19), 0  ;;  %p52_p4 = scmp.ne.s32.totalorder %s738_s13, %s734_s12 }
   0xa   : > { %p820_p3 = por %p47_p2, %p46_p1  ;;  %s35_s22 = ssub.s32 %s750_s16, %s963_s19 }
   0xb   : > { %p829_p5 = scmp.eq.s32.totalorder %s503_s18, 0  ;;  %p37_p6 = scmp.eq.s32.totalorder %s35_s22, 0 }
   0xc   : > { %p504_p7 = scmp.ge.s32.totalorder %s754_s17, 1  ;;  %p131_p9 = scmp.lt.s32.totalorder %s754_s17, 3 }
   0xd   : > { %p836_p8 = por %p829_p5, %p52_p4  ;;  %s756_s27 = smov [#allocation6]  }
   0xe   : > { %s842_s25 = scalar_select %p37_p6, %s742_s14, %s39_s20  }
   0xf   : > { %s953_s24 = scalar_select %p836_p8, 1, 0 }
  0x10   : > { %p844_p10 = pnand %p504_p7, %p131_p9  ;;  %s144_s28 = sshll.u32 %s756_s27, 4  ;;  %s145_s28 = int_to_ptr.vmem [resolvable:$true] %s144_s28 }
  0x11   : > { %s631_s29 = scalar_lea.vmem %s145_s28, 64  ;;  %p639_p4 = scmp.lt.s32.totalorder %s145_s28, %s145_s28 }
  0x12   : > { %p549_p11 = pneg %p844_p10  ;;  %p632_p0 = scmp.ne.s32.totalorder %s145_s28, %s631_s29 }
  0x13   : > { %p640_p6 = scmp.lt.s32.totalorder %s631_s29, %s631_s29 }
  0x14   : > { %p550_p12 = pnand %p549_p11, %p829_p5 }
  0x15   : > { %p641_p8 = por %p640_p6, %p639_p4 }
  0x16   : > { %p622_p13 = pneg %p550_p12 }
  0x18   : > { %p634_p1 = pnand %p632_p0, %p622_p13 }
  0x1a   : > { %p635_p2 = pneg %p634_p1 }
  0x1c   : > { %p642_p7 = pnand %p641_p8, %p635_p2 }
  0x1e   : > { %645 = shalt.err (!%p642_p7)
}
  0x1f   : > { %552 = dma.hbm_to_vmem [thread:$0]  (!%p550_p12), %s947_s1, 64, %s145_s28, [#allocation7]  }
  0x20   : > { %p506_p9 = scmp.ge.s32.totalorder %s754_s17, 2 }
  0x22   : > { %154 = sbr.rel (%p506_p9) target bundleno = 62 (0x3e), region = 24 }
  0x27   : > { %157 = sbr.rel (!%p820_p3) target bundleno = 62 (0x3e), region = 28  ;;  %s158_s5 = sand.u32 (%p820_p3), 1, %s742_s14  }
  0x28   : > { %s508_s6 = sshll.u32 (%p820_p3), %s750_s16, 1  ;;  %s507_s7 = sshll.u32 (%p820_p3), %s158_s5, 4 }
  0x29   : > { %s165_s8 = ssub.s32 (%p820_p3), 3, %s508_s6  ;;  %s866_s11 = scalar_lea.sflag (%p820_p3), [#allocation4], %s158_s5 }
  0x2a   : > { %p166_p11 = scmp.lt.s32.totalorder (%p820_p3), %s165_s8, 2  ;;  %s162_s12 = scalar_lea.vmem (%p820_p3), [#allocation3], %s507_s7 }
  0x2c   : > { %s965_s8 = smov (!%p166_p11, %s165_s8), 2 }
  0x2d   : > { %s863_s9 = sshll.u32 %s965_s8, 7 }
  0x2e   : > { %s170_s10 = ssub.s32 256, %s863_s9 }
  0x2f   : > { %171 = vsyncadd %s866_s11, %s170_s10  ;;  %p510_p3 = scmp.ne.s32.totalorder %s863_s9, 0  ;;  %s530_s20 = sshll.u32 %s750_s16, 7 }
  0x30   : > { %s176_s27 = scalar_lea.hbm %s946_s0, %s530_s20  ;;  %s512_s28 = sshll.u32 %s965_s8, 2 }
  0x31   : > { %s179_s29 = sshll.u32 %s162_s12, 4  ;;  %s757_s4 = smov [#allocation3]   ;;  %s180_s29 = int_to_ptr.vmem [resolvable:$true] %s179_s29 }
  0x32   : > { %s658_s30 = scalar_lea.vmem %s180_s29, %s863_s9  ;;  %s662_s5 = sshll.u32 %s757_s4, 4  ;;  %s663_s5 = int_to_ptr.vmem [resolvable:$false] %s662_s5 }
  0x33   : > { %p659_p8 = scmp.ne.s32.totalorder %s180_s29, %s658_s30  ;;  %s664_s6 = scalar_lea.vmem %s663_s5, 512 }
  0x34   : > { %p665_p0 = scmp.lt.s32.totalorder %s180_s29, %s663_s5  ;;  %p666_p1 = scmp.lt.s32.totalorder %s664_s6, %s658_s30 }
  0x35   : > { %p660_p12 = pnand %p659_p8, %p510_p3 }
  0x36   : > { %p667_p2 = por %p666_p1, %p665_p0 }
  0x37   : > { %p661_p13 = pneg %p660_p12 }
  0x39   : > { %p668_p4 = pnand %p667_p2, %p661_p13 }
  0x3b   : > { %671 = shalt.err (!%p668_p4)
}
  0x3c   : > { %s758_s7 = smov 192   ;;  %s759_s8 = smov 128  }
  0x3d   : > { %185 = dma.hbm_to_vmem [thread:$0]  (%p510_p3), %s176_s27, %s863_s9, %s180_s29, %s866_s11, %s758_s7, %s759_s8, %s512_s28  }
  0x3e PF: > { %191 = sbr.rel (%p844_p10) target bundleno = 658 (0x292), region = 32  ;;  %s193_s10 = sand.u32 (!%p844_p10), 1, %s738_s13  }
  0x3f   : > { %s516_s12 = sshll.u32 (!%p844_p10), %s193_s10, 4  ;;  %s194_s20 = scalar_lea.sflag (!%p844_p10), [#allocation4], %s193_s10 }
  0x40   : > { %s885_s21 = scalar_lea.vmem (!%p844_p10), [#allocation3], %s516_s12  ;;  %p955_p6 = scmp.ne.s32.totalorder (!%p844_p10), %s953_s24, 0 }
  0x43   : > { %721 = dma.done.wait (%p955_p6), %s194_s20, 256  }
  0x44   : > { %723 = vsyncadd (%p955_p6), %s194_s20, 4294967040 }
  0x45   : > { %725 = dma.done.wait (%p829_p5), [#allocation7], 64  }
  0x46   : > { %727 = vsyncadd (%p829_p5), [#allocation7], 4294967232  ;;  %p518_p10 = scmp.ne.s32.totalorder %s746_s15, 0 }
  0x48   : > { %228 = sbr.rel (%p518_p10) target bundleno = 79 (0x4f), region = 44 }
  0x4d   : > { %vm229_vm0 = vcmask 25600   ;;  %v760_v0 = vmov 0.0  }
  0x4e   : > { %230 = vst.msk [vmem:[#allocation2] sm:$0x3] %vm229_vm0, %v760_v0 }
  0x4f PF: > { %p519_p7 = scmp.eq.s32.totalorder %s746_s15, 1 }
  0x51   : > { %234 = sbr.rel (%p519_p7) target bundleno = 240 (0xf0), region = 48 }
  0x56   : > { %v236_v1 = vld [vmem:[%s885_s21] sm:$0xff]  ;;  %vm244_vm1 = vcmask 1043456   ;;  %v237_v2 = vld [vmem:[%s885_s21 + $0x8] sm:$0xff]  ;;  %v257_v11 = vlaneseq  ;;  %vm267_vm2 = vcmask 1041409   ;;  %vm271_vm3 = vcmask 25600  }
  0x57   : > { %v240_v3 = vcombine.high %v236_v1, %v236_v1  ;;  %v245_v4 = vsel %vm244_vm1, %v236_v1, 0.0  ;;  %v241_v5 = vcombine.high %v237_v2, %v237_v2  ;;  %v250_v7 = vsel %vm244_vm1, %v237_v2, 0.0  ;;  %v235_v18 = vld [vmem:[#allocation2] sm:$0x3] }
  0x58   : > { %v258_v12 = vand.u32 127, %v257_v11  ;;  %v260_v13 = vshrl.u32 %v257_v11, 7 }
  0x59   : > { %v246_v6 = vsel %vm244_vm1, %v240_v3, 0.0  ;;  %v251_v8 = vsel %vm244_vm1, %v241_v5, 0.0 }
  0x5a   : > { %v247_v9 = vadd.f32 %v246_v6, %v245_v4  ;;  %v252_v10 = vadd.f32 %v251_v8, %v250_v7  ;;  %v261_v15 = vsub.s32 %v258_v12, %v260_v13 }
  0x5c   : > { %248 = vadd.xlane.f32.xlu0 %v247_v9 }
  0x60   : > { %253 = vadd.xlane.f32.xlu0 %v252_v10 }
  0xe5   : > { %v249_v14 = vpop.xlane.xlu0 %248 }
  0xe6   : > { %v262_v17 = vrot.slane %v249_v14, %v261_v15 }
  0xe9   : > { %v254_v16 = vpop.xlane.xlu0 %253 }
  0xea   : > { %v266_v19 = vrot.slane %v254_v16, %v261_v15 }
  0xec   : > { %v268_v20 = vsel %vm267_vm2, %v266_v19, %v262_v17 }
  0xed   : > { %v270_v21 = vadd.f32 %v268_v20, %v235_v18 }
  0xef   : > { %272 = vst.msk [vmem:[#allocation2] sm:$0x3] %vm271_vm3, %v270_v21 }
  0xf0 PF: > { %p520_p5 = scmp.ne.s32.totalorder %s746_s15, 1 }
  0xf1   : > { %s521_s23 = sshll.u32 (!%p520_p5), %s746_s15, 8 }
  0xf2   : > { %276 = sbr.rel (%p520_p5) target bundleno = 643 (0x283), region = 52 }
  0xf7   : > { %v280_v22 = vlaneseq  ;;  %v283_v23 = vstv %s521_s23  ;;  %v277_v24 = vld [vmem:[%s885_s21] sm:$0xff]  ;;  %v278_v26 = vld [vmem:[%s885_s21 + $0x8] sm:$0xff]  ;;  %vm299_vm4 = vcmask 1043456   ;;  %v761_v45 = vmov 0.0  }
  0xf8   : > { %v290_v31 = vcombine.high %v277_v24, %v277_v24  ;;  %v291_v32 = vcombine.high %v278_v26, %v278_v26  ;;  %v327_v44 = vld [vmem:[#allocation6] sm:$0xf]  ;;  %535 = vmatprep.subr.mxu0 %v761_v45  ;;  %vm762_vm7 = vmmov 0   ;;  %vm320_vm8 = vcmask 1041409   ;;  %v298_v49 = vld [vmem:[#allocation2] sm:$0x3] }
  0xf9   : > { %v281_v25 = vand.u32 127, %v280_v22  ;;  %v313_v27 = vshrl.u32 %v280_v22, 7  ;;  %537 = vmatprep.mubr.msk.f32.mxu0 %vm762_vm7, %v761_v45  ;;  %536 = vmatpush3.msk.msra.mxu0 %vm299_vm4, %v327_v44  ;;  %vm324_vm9 = vcmask 25600   ;;  %vm335_vm10 = vcmask 31744   ;;  %v522_v54 = vld [vmem:[%s948_s2] ss:$0 sm:$0xff] }
  0xfa   : > { %vm418_vm11 = vcmask 58368  }
  0xfb   : > { %v282_v28 = vadd.s32 128, %v281_v25  ;;  %v284_v29 = vadd.s32 %v283_v23, %v281_v25  ;;  %v314_v30 = vsub.s32 %v281_v25, %v313_v27 }
  0xfd   : > { %v285_v33 = vadd.s32 %v283_v23, %v282_v28  ;;  %vm286_vm5 = vcmp.lt.s32.totalorder %v284_v29, 324 }
  0xfe   : > { %v294_v34 = vsel %vm286_vm5, %v277_v24, 0.0  ;;  %v296_v35 = vsel %vm286_vm5, %v278_v26, 0.0 }
  0xff   : > { %vm287_vm6 = vcmp.lt.s32.totalorder %v285_v33, 324  ;;  %v300_v36 = vsel %vm299_vm4, %v294_v34, 0.0  ;;  %v305_v40 = vsel %vm299_vm4, %v296_v35, 0.0 }
 0x100   : > { %v295_v37 = vsel %vm287_vm6, %v290_v31, 0.0  ;;  %v297_v38 = vsel %vm287_vm6, %v291_v32, 0.0 }
 0x101   : > { %v301_v39 = vsel %vm299_vm4, %v295_v37, 0.0  ;;  %v306_v41 = vsel %vm299_vm4, %v297_v38, 0.0 }
 0x102   : > { %v302_v42 = vadd.f32 %v301_v39, %v300_v36  ;;  %v307_v43 = vadd.f32 %v306_v41, %v305_v40 }
 0x104   : > { %303 = vadd.xlane.f32.xlu0 %v302_v42 }
 0x108   : > { %308 = vadd.xlane.f32.xlu0 %v307_v43 }
 0x18d   : > { %v304_v46 = vpop.xlane.xlu0 %303 }
 0x18e   : > { %v315_v48 = vrot.slane %v304_v46, %v314_v30 }
 0x191   : > { %v309_v47 = vpop.xlane.xlu0 %308 }
 0x192   : > { %v319_v50 = vrot.slane %v309_v47, %v314_v30 }
 0x194   : > { %v321_v51 = vsel %vm320_vm8, %v319_v50, %v315_v48 }
 0x195   : > { %v323_v52 = vadd.f32 %v321_v51, %v298_v49 }
 0x197   : > { %325 = vst.msk [vmem:[#allocation2] sm:$0x3] %vm324_vm9, %v323_v52 }
 0x19e   : > { %v326_v53 = vld [vmem:[#allocation2] sm:$0x3] }
 0x19f   : > { %538 = vmatmul.mubr.msk.f32.vlgmr.msra.gmra.mxu0 %vm335_vm10, %v326_v53 }
 0x25f   : > { %v408_v55 = vpop.f32.mrf.mxu0 }
 0x260   : > { %v409_v56 = vadd.f32 %v522_v54, %v408_v55 }
 0x261   : > { %v539_v57 = vpop.f32.mrf.mxu0 }
 0x262   : > { %v525_v58 = vmul.f32 -1.442695, %v409_v56 }
 0x264   : > { %616 = vpow2.f32 %v525_v58 }
 0x271   : > { %v617_v59 = vpop.eup %616 }
 0x272   : > { %v415_v60 = vadd.f32 1.0, %v617_v59 }
 0x274   : > { %618 = vrcp.f32 %v415_v60 }
 0x281   : > { %v619_v61 = vpop.eup %618 }
 0x282   : > { %419 = vst.msk [vmem:[#allocation8] sm:$0x3] %vm418_vm11, %v619_v61 }
 0x283 PF: > { %p913_p9 = scmp.eq.s32.totalorder %s503_s18, 1  ;;  %s763_s9 = smov [#allocation8]  }
 0x284   : > { %s429_s11 = sshll.u32 %s763_s9, 4  ;;  %s430_s11 = int_to_ptr.vmem [resolvable:$true] %s429_s11 }
 0x285   : > { %s672_s22 = scalar_lea.vmem %s430_s11, 32  ;;  %p679_p12 = scmp.lt.s32.totalorder %s430_s11, %s430_s11 }
 0x286   : > { %p673_p11 = scmp.ne.s32.totalorder %s430_s11, %s672_s22  ;;  %p680_p13 = scmp.lt.s32.totalorder %s672_s22, %s672_s22 }
 0x288   : > { %p674_p3 = pnand %p673_p11, %p913_p9  ;;  %p681_p0 = por %p680_p13, %p679_p12 }
 0x28a   : > { %p675_p8 = pneg %p674_p3 }
 0x28c   : > { %p682_p1 = pnand %p681_p0, %p675_p8 }
 0x28e   : > { %685 = shalt.err (!%p682_p1)
}
 0x28f   : > { %546 = dma.vmem_to_hbm [thread:$0]  (%p913_p9), %s430_s11, 32, %s949_s3, [#allocation5]  }
 0x290   : > { %729 = dma.done.wait (%p913_p9), [#allocation5], 32  }
 0x291   : > { %731 = vsyncadd (%p913_p9), [#allocation5], 4294967264 }
 0x292 PF: > { %s18_s17 = sadd.s32 1, %s754_s17   ;;  %s957_s12 = smov %s738_s13 }
 0x293   : > { %p15_p2 = scmp.ge.s32.totalorder %s18_s17, 4   ;;  %s958_s13 = smov %s742_s14 }
 0x294   : > { %s959_s14 = smov %s842_s25  ;;  %s960_s15 = smov %s750_s16 }
 0x295   : > { %s961_s16 = smov %s963_s19  ;;  %17 = sbr.rel (!%p15_p2) target bundleno = 6 (0x6), region = 86 }
 0x29a   :  { %442 = vsyncpa [#allocation4], 1 }
 0x29b   :  { %444 = vsyncpa [#allocation4 + $0x1], 1 }
 0x29c   :  { %445 = vsyncpa [#allocation7], 1 }
 0x29d   :  { %446 = vsyncpa [#allocation5], 1 }
 0x29e   :  { %448 = vsyncpa [#allocation5 + $0x1], 1 }

</bundles_post_ra>
